<compile_context>
chip_gen: v7x
topology: tpu7x:2x2x1
jax: 0.10.0
libtpu: 0.0.40
codegen_flags: <defaults>
</compile_context>

<pallas_src>
import functools

import jax
import jax.numpy as jnp
from jax import lax
from jax.experimental import pallas as pl
from jax.experimental.pallas import tpu as pltpu


def _round_up(x, m):
    return (x + m - 1) // m * m


def _vmem_bytes(shape, dtype):
    """Layout-padded VMEM footprint ((8,128) f32 / (16,128) bf16 tiles)."""
    itemsize = jnp.dtype(dtype).itemsize
    sublane = 8 * (4 // itemsize) if itemsize < 4 else 8
    lead = 1
    for s in shape[:-2]:
        lead *= s
    rows = _round_up(shape[-2], sublane) if len(shape) >= 2 else 1
    cols = _round_up(shape[-1], 128)
    return lead * rows * cols * itemsize


def _tpu_vmem_capacity_bytes():
    """Physical per-core VMEM; conservative 64 MiB (v7x) fallback."""
    try:
        info = pltpu.get_tpu_info()
        cap = getattr(info, "vmem_capacity_bytes", None)
        if cap:
            return int(cap)
    except Exception:
        pass
    return 64 << 20


# dot_general dimension numbers for 2-D operands:
_DN_RT = (((1,), (1,)), ((), ()))   # contract last dims   -> lhs @ rhs.T  (MXU-native)
_DN_LT = (((0,), (0,)), ((), ()))   # contract first dims  -> lhs.T @ rhs


def _lgcl_kernel(n_layers, hyper_layers,
                 a_ref, umuls_ref, vt_ref, eu0_ref, ei0t_ref,
                 out_u_ref, out_i_ref,
                 eu_b16, ei_t_b16, zi_t_acc):
    f32 = jnp.float32
    bf16 = jnp.bfloat16
    tm = a_ref.shape[0]

    layer = pl.program_id(0)                 # 0 .. n_layers-1
    r = pl.program_id(1)                     # A row-tile index
    n_r = pl.num_programs(1)
    row0 = pl.multiple_of(r * tm, tm)

    # ---- one-time init -------------------------------------------------------
    @pl.when((layer == 0) & (r == 0))
    def _init():
        eu0 = eu0_ref[...]                   # (Up, d) f32
        ei0t = ei0t_ref[...]                 # (d, I)  f32
        eu_b16[...] = eu0.astype(bf16)
        ei_t_b16[...] = ei0t.astype(bf16)
        out_u_ref[0] = eu0                   # running sum(E_u_list), starts with layer 0
        out_i_ref[0] = ei0t
        if hyper_layers == 0:                # static: hyper capture is layer 0
            out_u_ref[2] = eu0
            out_i_ref[2] = ei0t

    # ---- fused low-rank G sums ----------------------------------------------
    # At (last layer, r == 0) the running sums out_*[0] hold exactly
    # sum_{l=0..n_layers-1} E^l (the last layer's Z has not been folded yet),
    # which is the linear operand of the summed low-rank propagation.  Doing the
    # 4 small matmuls here overlaps them with the last layer's A streaming.
    @pl.when((layer == n_layers - 1) & (r == 0))
    def _g_sums():
        sum_ei_t = out_i_ref[0]              # (d, I)  = (sum E_i)^T
        sum_eu = out_u_ref[0]                # (Up, d)
        vt = vt_ref[...]                     # (q, I)  = V_q^T
        u_s = umuls_ref[...]                 # (Up, q) = U_q diag(s)
        t1 = lax.dot_general(vt, sum_ei_t, _DN_RT, preferred_element_type=f32)      # (q, d)
        out_u_ref[1] = jnp.dot(u_s, t1, preferred_element_type=f32)                 # (Up, d)
        t2 = lax.dot_general(u_s, sum_eu, _DN_LT, preferred_element_type=f32)       # (q, d)
        out_i_ref[1] = lax.dot_general(t2, vt, _DN_LT, preferred_element_type=f32)  # (d, I)

    # ---- per-layer init: reset the transposed Z_i accumulator ----------------
    @pl.when(r == 0)
    def _layer_init():
        zi_t_acc[...] = jnp.zeros_like(zi_t_acc)

    # ---- streamed A row-tile --------------------------------------------------
    a = a_ref[...]                                        # (tm, I) bf16
    eu_rows = eu_b16[pl.ds(row0, tm), :]                  # (tm, d) bf16 (read before overwrite)
    # Z_u rows = A_tile @ E_i   (E_i kept transposed -> MXU-native rhs-T contraction)
    zu_tile = lax.dot_general(a, ei_t_b16[...], _DN_RT,
                              preferred_element_type=f32)                 # (tm, d) f32
    # Z_i^T  += E_u_rows^T @ A_tile  (any materialized transpose hits the small (tm, d) operand)
    zi_t_acc[...] = zi_t_acc[...] + lax.dot_general(eu_rows, a, _DN_LT,
                                                    preferred_element_type=f32)   # (d, I)

    # fold Z_u rows into the running E_u sum and roll the user recurrence in place
    out_u_ref[0, pl.ds(row0, tm), :] = out_u_ref[0, pl.ds(row0, tm), :] + zu_tile
    eu_b16[pl.ds(row0, tm), :] = zu_tile.astype(bf16)     # E_u^{layer+1} rows (bf16 MXU operand)

    if 1 <= hyper_layers <= n_layers:                     # static guard
        @pl.when(layer == hyper_layers - 1)
        def _capture_hyper_u():
            out_u_ref[2, pl.ds(row0, tm), :] = zu_tile    # E_u^{hyper_layers} rows

    # ---- end of layer: fold Z_i and roll the item recurrence ------------------
    @pl.when(r == n_r - 1)
    def _layer_fini():
        zi_t = zi_t_acc[...]
        out_i_ref[0] = out_i_ref[0] + zi_t
        ei_t_b16[...] = zi_t.astype(bf16)                 # E_i^{layer+1}^T (bf16 MXU operand)

    if 1 <= hyper_layers <= n_layers:
        @pl.when((r == n_r - 1) & (layer == hyper_layers - 1))
        def _capture_hyper_i():
            out_i_ref[2] = zi_t_acc[...]                  # E_i^{hyper_layers}^T


def lgcl_forward(norm_adj, user_emb, item_emb, users, items, *,
                 n_layers, q, hyper_layers, block_rows=None):
    assert n_layers >= 1, "n_layers must be >= 1"
    assert 0 <= hyper_layers <= n_layers, "hyper_layers must be in [0, n_layers]"

    f32, bf16 = jnp.float32, jnp.bfloat16
    U, I = norm_adj.shape
    d = user_emb.shape[1]

    # Glue: truncated SVD of the (dense stand-in for the sparse) adjacency.
    # TODO(synk): torch.svd_lowrank is a randomized sketch; exact top-q SVD used here.
    su, ss, svt = jnp.linalg.svd(norm_adj, full_matrices=False)
    u_mul_s = (su[:, :q] * ss[:q]).astype(f32)            # U_q diag(s), (U, q)
    vt_q = svt[:q, :].astype(f32)                         # V_q^T,       (q, I)

    cap = _tpu_vmem_capacity_bytes()
    budget = int(cap * 0.85)

    def _resident_bytes(Up):
        # single-buffered (Buffered(1)) invariant inputs + output slabs + scratch
        return (_vmem_bytes((Up, q), f32) + _vmem_bytes((q, I), f32)
                + _vmem_bytes((Up, d), f32) + _vmem_bytes((d, I), f32)
                + _vmem_bytes((3, Up, d), f32) + _vmem_bytes((3, d, I), f32)
                + _vmem_bytes((Up, d), bf16) + _vmem_bytes((d, I), bf16)
                + _vmem_bytes((d, I), f32))

    def _a_tile_bytes(tm):
        return 2 * _vmem_bytes((tm, I), bf16)             # double-buffered A stream

    if block_rows is None:
        # Generation-aware row-tile: the biggest multiple of 256 whose double-buffered
        # (tm, I) bf16 A stream fits next to the resident state within ~85% of VMEM.
        up_est = _round_up(max(U, 256), 256)
        avail = budget - _resident_bytes(up_est) - (2 << 20)
        per_row = 2 * 2 * _round_up(I, 128)               # bytes/row, double-buffered bf16
        tm = max(256, (max(avail, 0) // per_row) // 256 * 256)
        tm = min(tm, up_est)
        while tm > 256:
            if _resident_bytes(_round_up(U, tm)) + _a_tile_bytes(tm) + (2 << 20) <= budget:
                break
            tm = max(256, (tm // 2) // 256 * 256)
    else:
        # explicit override (multiple of 16 keeps bf16 sublane slices aligned);
        # used to exercise multi-tile streaming + row padding at toy sizes.
        tm = _round_up(min(block_rows, U), 16)

    Up = _round_up(U, tm)
    n_r = Up // tm
    pad_u = Up - U

    a_b16 = jnp.pad(norm_adj.astype(f32), ((0, pad_u), (0, 0))).astype(bf16)
    user_emb_p = jnp.pad(user_emb.astype(f32), ((0, pad_u), (0, 0)))
    u_mul_s_p = jnp.pad(u_mul_s, ((0, pad_u), (0, 0)))
    item_emb_t = item_emb.astype(f32).T                   # (d, I)

    est = _resident_bytes(Up) + _a_tile_bytes(tm)
    vmem_limit = int(min(cap * 0.92, max(int(est * 1.25) + (2 << 20), 32 << 20)))
    vmem_limit = max(vmem_limit, est + (1 << 20))
    vmem_limit = min(vmem_limit, int(cap * 0.95))

    kernel = functools.partial(_lgcl_kernel, n_layers, hyper_layers)
    inv = dict(pipeline_mode=pl.Buffered(1))              # grid-invariant -> single buffer

    out_u, out_i = pl.pallas_call(
        kernel,
        grid=(n_layers, n_r),
        out_shape=(
            jax.ShapeDtypeStruct((3, Up, d), f32),        # [sum E_u, sum G_u, E_u hyper]
            jax.ShapeDtypeStruct((3, d, I), f32),         # [sum E_i, sum G_i, E_i hyper]^T
        ),
        in_specs=[
            pl.BlockSpec((tm, I), lambda l, r: (r, 0)),          # A, streamed row-tiles
            pl.BlockSpec((Up, q), lambda l, r: (0, 0), **inv),   # U_q diag(s)
            pl.BlockSpec((q, I), lambda l, r: (0, 0), **inv),    # V_q^T
            pl.BlockSpec((Up, d), lambda l, r: (0, 0), **inv),   # E_u layer 0
            pl.BlockSpec((d, I), lambda l, r: (0, 0), **inv),    # E_i^T layer 0
        ],
        out_specs=(
            pl.BlockSpec((3, Up, d), lambda l, r: (0, 0, 0), **inv),
            pl.BlockSpec((3, d, I), lambda l, r: (0, 0, 0), **inv),
        ),
        scratch_shapes=[
            pltpu.VMEM((Up, d), bf16),    # E_u^{layer}   (bf16 MXU operand)
            pltpu.VMEM((d, I), bf16),     # E_i^{layer}^T (bf16 MXU operand)
            pltpu.VMEM((d, I), f32),      # Z_i^T accumulator (f32)
        ],
        compiler_params=pltpu.CompilerParams(
            # Both grid axes carry a sequential recurrence / in-place reduction.
            dimension_semantics=("arbitrary", "arbitrary"),
            vmem_limit_bytes=vmem_limit,
        ),
    )(a_b16, u_mul_s_p, vt_q, user_emb_p, item_emb_t)

    E_u = out_u[0, :U, :]
    G_u = out_u[1, :U, :]
    E_u_hyp = out_u[2, :U, :]
    E_i = out_i[0].T
    G_i = out_i[1].T
    E_i_hyp = out_i[2].T

    return {
        'user_embeddings': E_u[users, :],
        'item_embeddings': E_i[items, :],
        'G_user_embeddings': G_u[users, :],
        'G_item_embeddings': G_i[items, :],
        'context_embedding': jnp.concatenate([E_u_hyp, E_i_hyp], axis=0),
    }


def _reference(norm_adj, user_emb, item_emb, users, items, *,
               n_layers, q, hyper_layers):
    su, ss, svt = jnp.linalg.svd(norm_adj, full_matrices=False)
    svd_u, svd_s, svd_v = su[:, :q], ss[:q], svt[:q, :].T
    u_mul_s = svd_u @ jnp.diag(svd_s)
    v_mul_s = svd_v @ jnp.diag(svd_s)
    vt, ut = svd_v.T, svd_u.T
    E_u_list, E_i_list = [user_emb], [item_emb]
    G_u_list, G_i_list = [], []
    for layer in range(1, n_layers + 1):
        Z_u = norm_adj @ E_i_list[layer - 1]
        Z_i = norm_adj.T @ E_u_list[layer - 1]
        G_u = u_mul_s @ (vt @ E_i_list[layer - 1])
        G_i = v_mul_s @ (ut @ E_u_list[layer - 1])
        E_u_list.append(Z_u)
        E_i_list.append(Z_i)
        G_u_list.append(G_u)
        G_i_list.append(G_i)
    E_u, E_i = sum(E_u_list), sum(E_i_list)
    G_u, G_i = sum(G_u_list), sum(G_i_list)
    return {
        'user_embeddings': E_u[users, :],
        'item_embeddings': E_i[items, :],
        'G_user_embeddings': G_u[users, :],
        'G_item_embeddings': G_i[items, :],
        'context_embedding': jnp.concatenate(
            [E_u_list[hyper_layers], E_i_list[hyper_layers]], axis=0),
    }


if __name__ == "__main__":
    key = jax.random.PRNGKey(0)
    U, I, d, q = 100, 80, 32, 8
    n_layers, hyper_layers = 3, 1

    k1, k2, k3 = jax.random.split(key, 3)

    # Deterministic xavier_uniform init (same shapes as the nn.ParameterDict).
    bu = float(jnp.sqrt(6.0 / (U + d)))
    bi = float(jnp.sqrt(6.0 / (I + d)))
    user_emb = jax.random.uniform(k1, (U, d), jnp.float32, -bu, bu)
    item_emb = jax.random.uniform(k2, (I, d), jnp.float32, -bi, bi)

    # Synthetic symmetric-normalized bipartite adjacency (dense stand-in for the
    # scipy sparse norm_adj / torch sparse tensor).
    mask = (jax.random.uniform(k3, (U, I)) < 0.1).astype(jnp.float32)
    du = jnp.clip(mask.sum(axis=1, keepdims=True), 1.0)
    di = jnp.clip(mask.sum(axis=0, keepdims=True), 1.0)
    norm_adj = mask / jnp.sqrt(du) / jnp.sqrt(di)

    users = jnp.array([0, 5, 17, 63, 99], dtype=jnp.int32)
    items = jnp.array([2, 9, 41, 79], dtype=jnp.int32)

    ref = _reference(norm_adj, user_emb, item_emb, users, items,
                     n_layers=n_layers, q=q, hyper_layers=hyper_layers)

    # block_rows=32 exercises the multi-tile row-streaming + padding path at toy
    # size; block_rows=None exercises the VMEM-budget-derived auto tiling path.
    for br in (32, None):
        out = lgcl_forward(norm_adj, user_emb, item_emb, users, items,
                           n_layers=n_layers, q=q, hyper_layers=hyper_layers,
                           block_rows=br)
        jax.block_until_ready(out)
        for k in out:
            assert out[k].shape == ref[k].shape, (br, k, out[k].shape, ref[k].shape)
            # bf16 MXU operands propagate through the recurrence -> loosened tolerance.
            assert jnp.allclose(out[k], ref[k], rtol=5e-2, atol=1e-2), (
                br, k, float(jnp.max(jnp.abs(out[k] - ref[k]))))

    print("KERNEL_OK")
</pallas_src>

<mosaic_0001>
module attributes {stable_mosaic.version = 11 : i64} {
  func.func @_lgcl_kernel(%arg0: i32, %arg1: i32, %arg2: memref<32x80xbf16, #tpu.memory_space<vmem>>, %arg3: memref<128x8xf32, #tpu.memory_space<vmem>>, %arg4: memref<8x80xf32, #tpu.memory_space<vmem>>, %arg5: memref<128x32xf32, #tpu.memory_space<vmem>>, %arg6: memref<32x80xf32, #tpu.memory_space<vmem>>, %arg7: memref<3x128x32xf32, #tpu.memory_space<vmem>>, %arg8: memref<3x32x80xf32, #tpu.memory_space<vmem>>, %arg9: memref<128x32xbf16, #tpu.memory_space<vmem>>, %arg10: memref<32x80xbf16, #tpu.memory_space<vmem>>, %arg11: memref<32x80xf32, #tpu.memory_space<vmem>>) attributes {dimension_semantics = [#tpu.dimension_semantics<arbitrary>, #tpu.dimension_semantics<arbitrary>], iteration_bounds = array<i64: 3, 4>, scalar_prefetch = 0 : i64, scratch_operands = 3 : i64, tpu.core_type = #tpu.core_type<tc>, window_params = [{transform_indices = @transform_0, window_bounds = array<i64: 32, 80>}, {pipeline_mode = #tpu.pipeline_mode<synchronous>, transform_indices = @transform_1, window_bounds = array<i64: 128, 8>}, {pipeline_mode = #tpu.pipeline_mode<synchronous>, transform_indices = @transform_2, window_bounds = array<i64: 8, 80>}, {pipeline_mode = #tpu.pipeline_mode<synchronous>, transform_indices = @transform_3, window_bounds = array<i64: 128, 32>}, {pipeline_mode = #tpu.pipeline_mode<synchronous>, transform_indices = @transform_4, window_bounds = array<i64: 32, 80>}, {pipeline_mode = #tpu.pipeline_mode<synchronous>, transform_indices = @transform_5, window_bounds = array<i64: 3, 128, 32>}, {pipeline_mode = #tpu.pipeline_mode<synchronous>, transform_indices = @transform_6, window_bounds = array<i64: 3, 32, 80>}]} {
    %c32_i32 = arith.constant 32 : i32
    %0 = arith.muli %arg1, %c32_i32 : i32
    %1 = tpu.assume_multiple %0, 32 : i32
    %c0_i32 = arith.constant 0 : i32
    %2 = arith.cmpi eq, %arg0, %c0_i32 : i32
    %c0_i32_0 = arith.constant 0 : i32
    %3 = arith.cmpi eq, %arg1, %c0_i32_0 : i32
    %4 = arith.andi %2, %3 : i1
    %5 = arith.extui %4 : i1 to i32
    %c0_i32_1 = arith.constant 0 : i32
    %6 = arith.cmpi ne, %5, %c0_i32_1 : i32
    scf.if %6 {
      %c0_26 = arith.constant 0 : index
      %c0_27 = arith.constant 0 : index
      %46 = vector.load %arg5[%c0_26, %c0_27] : memref<128x32xf32, #tpu.memory_space<vmem>>, vector<128x32xf32>
      %c0_28 = arith.constant 0 : index
      %c0_29 = arith.constant 0 : index
      %47 = vector.load %arg6[%c0_28, %c0_29] : memref<32x80xf32, #tpu.memory_space<vmem>>, vector<32x80xf32>
      %48 = arith.truncf %46 : vector<128x32xf32> to vector<128x32xbf16>
      %c0_30 = arith.constant 0 : index
      %c0_31 = arith.constant 0 : index
      %49 = vector.load %arg9[%c0_30, %c0_31] : memref<128x32xbf16, #tpu.memory_space<vmem>>, vector<128x32xbf16>
      tpu.vector_store %arg9[%c0_30, %c0_31], %48 {strides = array<i32>} : memref<128x32xbf16, #tpu.memory_space<vmem>>, vector<128x32xbf16>,
      %50 = arith.truncf %47 : vector<32x80xf32> to vector<32x80xbf16>
      %c0_32 = arith.constant 0 : index
      %c0_33 = arith.constant 0 : index
      %51 = vector.load %arg10[%c0_32, %c0_33] : memref<32x80xbf16, #tpu.memory_space<vmem>>, vector<32x80xbf16>
      tpu.vector_store %arg10[%c0_32, %c0_33], %50 {strides = array<i32>} : memref<32x80xbf16, #tpu.memory_space<vmem>>, vector<32x80xbf16>,
      %c0_34 = arith.constant 0 : index
      %c0_35 = arith.constant 0 : index
      %c0_36 = arith.constant 0 : index
      %52 = vector.load %arg7[%c0_34, %c0_35, %c0_36] : memref<3x128x32xf32, #tpu.memory_space<vmem>>, vector<1x128x32xf32>
      %53 = vector.shape_cast %52 : vector<1x128x32xf32> to vector<128x32xf32>
      %54 = vector.shape_cast %46 : vector<128x32xf32> to vector<1x128x32xf32>
      tpu.vector_store %arg7[%c0_34, %c0_35, %c0_36], %54 {strides = array<i32>} : memref<3x128x32xf32, #tpu.memory_space<vmem>>, vector<1x128x32xf32>,
      %c0_37 = arith.constant 0 : index
      %c0_38 = arith.constant 0 : index
      %c0_39 = arith.constant 0 : index
      %55 = vector.load %arg8[%c0_37, %c0_38, %c0_39] : memref<3x32x80xf32, #tpu.memory_space<vmem>>, vector<1x32x80xf32>
      %56 = vector.shape_cast %55 : vector<1x32x80xf32> to vector<32x80xf32>
      %57 = vector.shape_cast %47 : vector<32x80xf32> to vector<1x32x80xf32>
      tpu.vector_store %arg8[%c0_37, %c0_38, %c0_39], %57 {strides = array<i32>} : memref<3x32x80xf32, #tpu.memory_space<vmem>>, vector<1x32x80xf32>,
    } else {
    }
    %c2_i32 = arith.constant 2 : i32
    %7 = arith.cmpi eq, %arg0, %c2_i32 : i32
    %c0_i32_2 = arith.constant 0 : i32
    %8 = arith.cmpi eq, %arg1, %c0_i32_2 : i32
    %9 = arith.andi %7, %8 : i1
    %10 = arith.extui %9 : i1 to i32
    %c0_i32_3 = arith.constant 0 : i32
    %11 = arith.cmpi ne, %10, %c0_i32_3 : i32
    scf.if %11 {
      %c0_26 = arith.constant 0 : index
      %c0_27 = arith.constant 0 : index
      %c0_28 = arith.constant 0 : index
      %46 = vector.load %arg8[%c0_26, %c0_27, %c0_28] : memref<3x32x80xf32, #tpu.memory_space<vmem>>, vector<1x32x80xf32>
      %47 = vector.shape_cast %46 : vector<1x32x80xf32> to vector<32x80xf32>
      %c0_29 = arith.constant 0 : index
      %c0_30 = arith.constant 0 : index
      %c0_31 = arith.constant 0 : index
      %48 = vector.load %arg7[%c0_29, %c0_30, %c0_31] : memref<3x128x32xf32, #tpu.memory_space<vmem>>, vector<1x128x32xf32>
      %49 = vector.shape_cast %48 : vector<1x128x32xf32> to vector<128x32xf32>
      %c0_32 = arith.constant 0 : index
      %c0_33 = arith.constant 0 : index
      %50 = vector.load %arg4[%c0_32, %c0_33] : memref<8x80xf32, #tpu.memory_space<vmem>>, vector<8x80xf32>
      %c0_34 = arith.constant 0 : index
      %c0_35 = arith.constant 0 : index
      %51 = vector.load %arg3[%c0_34, %c0_35] : memref<128x8xf32, #tpu.memory_space<vmem>>, vector<128x8xf32>
      %cst_36 = arith.constant dense<0.000000e+00> : vector<8x32xf32>
      %52 = tpu.matmul %50, %47, %cst_36 {dimension_numbers = #tpu.dot_dimension_numbers<[1], [1], [0], [0], [0, 0, 1, 0], [], []>} : vector<8x80xf32>, vector<32x80xf32>, vector<8x32xf32> -> vector<8x32xf32>
      %cst_37 = arith.constant dense<0.000000e+00> : vector<128x32xf32>
      %53 = tpu.matmul %51, %52, %cst_37 {dimension_numbers = #tpu.dot_dimension_numbers<[1], [0], [0], [1], [0, 0, 1, 1], [], []>} : vector<128x8xf32>, vector<8x32xf32>, vector<128x32xf32> -> vector<128x32xf32>
      %c1 = arith.constant 1 : index
      %c0_38 = arith.constant 0 : index
      %c0_39 = arith.constant 0 : index
      %54 = vector.load %arg7[%c1, %c0_38, %c0_39] : memref<3x128x32xf32, #tpu.memory_space<vmem>>, vector<1x128x32xf32>
      %55 = vector.shape_cast %54 : vector<1x128x32xf32> to vector<128x32xf32>
      %56 = vector.shape_cast %53 : vector<128x32xf32> to vector<1x128x32xf32>
      tpu.vector_store %arg7[%c1, %c0_38, %c0_39], %56 {strides = array<i32>} : memref<3x128x32xf32, #tpu.memory_space<vmem>>, vector<1x128x32xf32>,
      %cst_40 = arith.constant dense<0.000000e+00> : vector<8x32xf32>
      %57 = tpu.matmul %51, %49, %cst_40 {dimension_numbers = #tpu.dot_dimension_numbers<[0], [0], [1], [1], [0, 1, 1, 1], [], []>} : vector<128x8xf32>, vector<128x32xf32>, vector<8x32xf32> -> vector<8x32xf32>
      %cst_41 = arith.constant dense<0.000000e+00> : vector<32x80xf32>
      %58 = tpu.matmul %57, %50, %cst_41 {dimension_numbers = #tpu.dot_dimension_numbers<[0], [0], [1], [1], [0, 1, 1, 1], [], []>} : vector<8x32xf32>, vector<8x80xf32>, vector<32x80xf32> -> vector<32x80xf32>
      %c1_42 = arith.constant 1 : index
      %c0_43 = arith.constant 0 : index
      %c0_44 = arith.constant 0 : index
      %59 = vector.load %arg8[%c1_42, %c0_43, %c0_44] : memref<3x32x80xf32, #tpu.memory_space<vmem>>, vector<1x32x80xf32>
      %60 = vector.shape_cast %59 : vector<1x32x80xf32> to vector<32x80xf32>
      %61 = vector.shape_cast %58 : vector<32x80xf32> to vector<1x32x80xf32>
      tpu.vector_store %arg8[%c1_42, %c0_43, %c0_44], %61 {strides = array<i32>} : memref<3x32x80xf32, #tpu.memory_space<vmem>>, vector<1x32x80xf32>,
    } else {
    }
    %c0_i32_4 = arith.constant 0 : i32
    %12 = arith.cmpi eq, %arg1, %c0_i32_4 : i32
    %13 = arith.extui %12 : i1 to i32
    %c0_i32_5 = arith.constant 0 : i32
    %14 = arith.cmpi ne, %13, %c0_i32_5 : i32
    scf.if %14 {
      %cst_26 = arith.constant 0.000000e+00 : f32
      %46 = vector.broadcast %cst_26 : f32 to vector<32x80xf32>
      %c0_27 = arith.constant 0 : index
      %c0_28 = arith.constant 0 : index
      %47 = vector.load %arg11[%c0_27, %c0_28] : memref<32x80xf32, #tpu.memory_space<vmem>>, vector<32x80xf32>
      tpu.vector_store %arg11[%c0_27, %c0_28], %46 {strides = array<i32>} : memref<32x80xf32, #tpu.memory_space<vmem>>, vector<32x80xf32>,
    } else {
    }
    %c0 = arith.constant 0 : index
    %c0_6 = arith.constant 0 : index
    %15 = vector.load %arg2[%c0, %c0_6] : memref<32x80xbf16, #tpu.memory_space<vmem>>, vector<32x80xbf16>
    %16 = arith.index_cast %1 : i32 to index
    %c0_7 = arith.constant 0 : index
    %17 = vector.load %arg9[%16, %c0_7] : memref<128x32xbf16, #tpu.memory_space<vmem>>, vector<32x32xbf16>
    %c0_8 = arith.constant 0 : index
    %c0_9 = arith.constant 0 : index
    %18 = vector.load %arg10[%c0_8, %c0_9] : memref<32x80xbf16, #tpu.memory_space<vmem>>, vector<32x80xbf16>
    %cst = arith.constant dense<0.000000e+00> : vector<32x32xf32>
    %19 = tpu.matmul %15, %18, %cst {dimension_numbers = #tpu.dot_dimension_numbers<[1], [1], [0], [0], [0, 0, 1, 0], [], []>} : vector<32x80xbf16>, vector<32x80xbf16>, vector<32x32xf32> -> vector<32x32xf32>
    %c0_10 = arith.constant 0 : index
    %c0_11 = arith.constant 0 : index
    %20 = vector.load %arg11[%c0_10, %c0_11] : memref<32x80xf32, #tpu.memory_space<vmem>>, vector<32x80xf32>
    %cst_12 = arith.constant dense<0.000000e+00> : vector<32x80xf32>
    %21 = tpu.matmul %17, %15, %cst_12 {dimension_numbers = #tpu.dot_dimension_numbers<[0], [0], [1], [1], [0, 1, 1, 1], [], []>} : vector<32x32xbf16>, vector<32x80xbf16>, vector<32x80xf32> -> vector<32x80xf32>
    %22 = arith.addf %20, %21 : vector<32x80xf32>
    %c0_13 = arith.constant 0 : index
    %c0_14 = arith.constant 0 : index
    %23 = vector.load %arg11[%c0_13, %c0_14] : memref<32x80xf32, #tpu.memory_space<vmem>>, vector<32x80xf32>
    tpu.vector_store %arg11[%c0_13, %c0_14], %22 {strides = array<i32>} : memref<32x80xf32, #tpu.memory_space<vmem>>, vector<32x80xf32>,
    %c0_15 = arith.constant 0 : index
    %24 = arith.index_cast %1 : i32 to index
    %c0_16 = arith.constant 0 : index
    %25 = vector.load %arg7[%c0_15, %24, %c0_16] : memref<3x128x32xf32, #tpu.memory_space<vmem>>, vector<1x32x32xf32>
    %26 = vector.shape_cast %25 : vector<1x32x32xf32> to vector<32x32xf32>
    %27 = arith.addf %26, %19 : vector<32x32xf32>
    %c0_17 = arith.constant 0 : index
    %28 = arith.index_cast %1 : i32 to index
    %c0_18 = arith.constant 0 : index
    %29 = vector.load %arg7[%c0_17, %28, %c0_18] : memref<3x128x32xf32, #tpu.memory_space<vmem>>, vector<1x32x32xf32>
    %30 = vector.shape_cast %29 : vector<1x32x32xf32> to vector<32x32xf32>
    %31 = vector.shape_cast %27 : vector<32x32xf32> to vector<1x32x32xf32>
    tpu.vector_store %arg7[%c0_17, %28, %c0_18], %31 {strides = array<i32>} : memref<3x128x32xf32, #tpu.memory_space<vmem>>, vector<1x32x32xf32>,
    %32 = arith.truncf %19 : vector<32x32xf32> to vector<32x32xbf16>
    %33 = arith.index_cast %1 : i32 to index
    %c0_19 = arith.constant 0 : index
    %34 = vector.load %arg9[%33, %c0_19] : memref<128x32xbf16, #tpu.memory_space<vmem>>, vector<32x32xbf16>
    tpu.vector_store %arg9[%33, %c0_19], %32 {strides = array<i32>} : memref<128x32xbf16, #tpu.memory_space<vmem>>, vector<32x32xbf16>,
    %c0_i32_20 = arith.constant 0 : i32
    %35 = arith.cmpi eq, %arg0, %c0_i32_20 : i32
    %36 = arith.extui %35 : i1 to i32
    %c0_i32_21 = arith.constant 0 : i32
    %37 = arith.cmpi ne, %36, %c0_i32_21 : i32
    scf.if %37 {
      %c2 = arith.constant 2 : index
      %46 = arith.index_cast %1 : i32 to index
      %c0_26 = arith.constant 0 : index
      %47 = vector.load %arg7[%c2, %46, %c0_26] : memref<3x128x32xf32, #tpu.memory_space<vmem>>, vector<1x32x32xf32>
      %48 = vector.shape_cast %47 : vector<1x32x32xf32> to vector<32x32xf32>
      %49 = vector.shape_cast %19 : vector<32x32xf32> to vector<1x32x32xf32>
      tpu.vector_store %arg7[%c2, %46, %c0_26], %49 {strides = array<i32>} : memref<3x128x32xf32, #tpu.memory_space<vmem>>, vector<1x32x32xf32>,
    } else {
    }
    %c3_i32 = arith.constant 3 : i32
    %38 = arith.cmpi eq, %arg1, %c3_i32 : i32
    %39 = arith.extui %38 : i1 to i32
    %c0_i32_22 = arith.constant 0 : i32
    %40 = arith.cmpi ne, %39, %c0_i32_22 : i32
    scf.if %40 {
      %c0_26 = arith.constant 0 : index
      %c0_27 = arith.constant 0 : index
      %46 = vector.load %arg11[%c0_26, %c0_27] : memref<32x80xf32, #tpu.memory_space<vmem>>, vector<32x80xf32>
      %c0_28 = arith.constant 0 : index
      %c0_29 = arith.constant 0 : index
      %c0_30 = arith.constant 0 : index
      %47 = vector.load %arg8[%c0_28, %c0_29, %c0_30] : memref<3x32x80xf32, #tpu.memory_space<vmem>>, vector<1x32x80xf32>
      %48 = vector.shape_cast %47 : vector<1x32x80xf32> to vector<32x80xf32>
      %49 = arith.addf %48, %46 : vector<32x80xf32>
      %c0_31 = arith.constant 0 : index
      %c0_32 = arith.constant 0 : index
      %c0_33 = arith.constant 0 : index
      %50 = vector.load %arg8[%c0_31, %c0_32, %c0_33] : memref<3x32x80xf32, #tpu.memory_space<vmem>>, vector<1x32x80xf32>
      %51 = vector.shape_cast %50 : vector<1x32x80xf32> to vector<32x80xf32>
      %52 = vector.shape_cast %49 : vector<32x80xf32> to vector<1x32x80xf32>
      tpu.vector_store %arg8[%c0_31, %c0_32, %c0_33], %52 {strides = array<i32>} : memref<3x32x80xf32, #tpu.memory_space<vmem>>, vector<1x32x80xf32>,
      %53 = arith.truncf %46 : vector<32x80xf32> to vector<32x80xbf16>
      %c0_34 = arith.constant 0 : index
      %c0_35 = arith.constant 0 : index
      %54 = vector.load %arg10[%c0_34, %c0_35] : memref<32x80xbf16, #tpu.memory_space<vmem>>, vector<32x80xbf16>
      tpu.vector_store %arg10[%c0_34, %c0_35], %53 {strides = array<i32>} : memref<32x80xbf16, #tpu.memory_space<vmem>>, vector<32x80xbf16>,
    } else {
    }
    %c3_i32_23 = arith.constant 3 : i32
    %41 = arith.cmpi eq, %arg1, %c3_i32_23 : i32
    %c0_i32_24 = arith.constant 0 : i32
    %42 = arith.cmpi eq, %arg0, %c0_i32_24 : i32
    %43 = arith.andi %41, %42 : i1
    %44 = arith.extui %43 : i1 to i32
    %c0_i32_25 = arith.constant 0 : i32
    %45 = arith.cmpi ne, %44, %c0_i32_25 : i32
    scf.if %45 {
      %c0_26 = arith.constant 0 : index
      %c0_27 = arith.constant 0 : index
      %46 = vector.load %arg11[%c0_26, %c0_27] : memref<32x80xf32, #tpu.memory_space<vmem>>, vector<32x80xf32>
      %c2 = arith.constant 2 : index
      %c0_28 = arith.constant 0 : index
      %c0_29 = arith.constant 0 : index
      %47 = vector.load %arg8[%c2, %c0_28, %c0_29] : memref<3x32x80xf32, #tpu.memory_space<vmem>>, vector<1x32x80xf32>
      %48 = vector.shape_cast %47 : vector<1x32x80xf32> to vector<32x80xf32>
      %49 = vector.shape_cast %46 : vector<32x80xf32> to vector<1x32x80xf32>
      tpu.vector_store %arg8[%c2, %c0_28, %c0_29], %49 {strides = array<i32>} : memref<3x32x80xf32, #tpu.memory_space<vmem>>, vector<1x32x80xf32>,
    } else {
    }
    return
  }
  func.func @transform_0(%arg0: i32, %arg1: i32) -> (i32, i32) {
    %c0_i32 = arith.constant 0 : i32
    %c0_i32_0 = arith.constant 0 : i32
    return %arg1, %c0_i32 : i32, i32
  }
  func.func @transform_1(%arg0: i32, %arg1: i32) -> (i32, i32) {
    %c0_i32 = arith.constant 0 : i32
    %c0_i32_0 = arith.constant 0 : i32
    %c0_i32_1 = arith.constant 0 : i32
    return %c0_i32, %c0_i32_0 : i32, i32
  }
  func.func @transform_2(%arg0: i32, %arg1: i32) -> (i32, i32) {
    %c0_i32 = arith.constant 0 : i32
    %c0_i32_0 = arith.constant 0 : i32
    %c0_i32_1 = arith.constant 0 : i32
    return %c0_i32, %c0_i32_0 : i32, i32
  }
  func.func @transform_3(%arg0: i32, %arg1: i32) -> (i32, i32) {
    %c0_i32 = arith.constant 0 : i32
    %c0_i32_0 = arith.constant 0 : i32
    %c0_i32_1 = arith.constant 0 : i32
    return %c0_i32, %c0_i32_0 : i32, i32
  }
  func.func @transform_4(%arg0: i32, %arg1: i32) -> (i32, i32) {
    %c0_i32 = arith.constant 0 : i32
    %c0_i32_0 = arith.constant 0 : i32
    %c0_i32_1 = arith.constant 0 : i32
    return %c0_i32, %c0_i32_0 : i32, i32
  }
  func.func @transform_5(%arg0: i32, %arg1: i32) -> (i32, i32, i32) {
    %c0_i32 = arith.constant 0 : i32
    %c0_i32_0 = arith.constant 0 : i32
    %c0_i32_1 = arith.constant 0 : i32
    %c0_i32_2 = arith.constant 0 : i32
    return %c0_i32, %c0_i32_0, %c0_i32_1 : i32, i32, i32
  }
  func.func @transform_6(%arg0: i32, %arg1: i32) -> (i32, i32, i32) {
    %c0_i32 = arith.constant 0 : i32
    %c0_i32_0 = arith.constant 0 : i32
    %c0_i32_1 = arith.constant 0 : i32
    %c0_i32_2 = arith.constant 0 : i32
    return %c0_i32, %c0_i32_0, %c0_i32_1 : i32, i32, i32
  }
}

</mosaic_0001>

<bundles_post_ra>
// kernel: tpu_custom_call.1
= control target key start
LH: loop header
LB: loop body
LE: loop exit
PB: predicated region body
PF: predicated region fallthrough
CT: control target
= control target key end

     0   :  { %12 = vsyncpa [#allocation6], 0  ;;  %s1627_s21 = smov 0   ;;  %s1629_s22 = smov 0   ;;  %s2132_s0 = inlined_call_operand.vmem [shape: bf16[128,80], index: 0, kind: input, shape index: {}]   ;;  %s2133_s1 = inlined_call_operand.vmem [shape: f32[128,8], index: 1, kind: input, shape index: {}]   ;;  %s2134_s2 = inlined_call_operand.vmem [shape: f32[8,80], index: 2, kind: input, shape index: {}]   ;;  %s2135_s3 = inlined_call_operand.vmem [shape: f32[128,32], index: 3, kind: input, shape index: {}]   ;;  %s2136_s4 = inlined_call_operand.vmem [shape: f32[32,80], index: 4, kind: input, shape index: {}]   ;;  %s2137_s5 = inlined_call_operand.vmem [shape: f32[3,128,32], index: 5, kind: output, shape index: {0}]   ;;  %s2138_s6 = inlined_call_operand.hbm [shape: f32[3,32,80], index: 6, kind: output, shape index: {1}]  }
   0x1   :  { %s1631_s23 = smov 0   ;;  %s1633_s24 = smov 0  }
   0x2   :  { %s1635_s25 = smov 0  }
   0x3 LB: > { %s1210_s26 = sadd.s32 4294967295, %s1583_s25   ;;  %s27_s27 = sadd.s32 1, %s1575_s23  ;;  %s1583_s25 = sphi %s1635_s25, %s18_s25   ;;  %s1579_s24 = sphi %s1633_s24, %s2143_s24   ;;  %s1575_s23 = sphi %s1631_s23, %s2142_s23   ;;  %s1571_s22 = sphi %s1629_s22, %s2141_s22   ;;  %s1567_s21 = sphi %s1627_s21, %s2140_s21  }
   0x4   : > { %p28_p0 = scmp.ge.s32.totalorder %s27_s27, 4  ;;  %s30_s28 = sadd.s32 1, %s1579_s24 }
   0x5   : > { %p1213_p1 = scmp.ge.s32.totalorder %s1583_s25, 1  ;;  %p219_p2 = scmp.lt.s32.totalorder %s1583_s25, 13 }
   0x6   : > { %s2145_s27 = smov (%p28_p0, %s27_s27), 0  ;;  %s2147_s28 = smov (!%p28_p0, %s30_s28), %s1579_s24 }
   0x7   : > { %p220_p3 = pnand %p1213_p1, %p219_p2  ;;  %p32_p4 = scmp.ge.s32.totalorder %s2147_s28, 3 }
   0x8   : > { %s1214_s29 = sshll.u32 (!%p220_p3), %s1567_s21, 2  ;;  %s1216_s30 = sshll.u32 (!%p220_p3), %s1567_s21, 5 }
   0x9   : > { %s2149_s28 = smov (%p32_p4, %s2147_s28), 0  ;;  %223 = sbr.rel (%p220_p3) target bundleno = 1250 (0x4e2), region = 40 }
   0xa   : > { %p245_p5 = scmp.lt.s32.totalorder (!%p220_p3), %s1214_s29, 15  ;;  %p252_p6 = scmp.eq.s32.totalorder (!%p220_p3), %s1571_s22, 0 }
   0xb   : > { %p253_p7 = scmp.eq.s32.totalorder (!%p220_p3), %s1567_s21, 0 }
   0xd   : > { %p254_p8 = pnand (!%p220_p3), %p253_p7, %p252_p6 }
  0x10   : > { %s2151_s29 = smov (!%p245_p5, %s1214_s29), 15  ;;  %257 = sbr.rel (%p254_p8) target bundleno = 33 (0x21), region = 44 }
  0x11   : > { %s1215_s7 = sshll.u32 %s2151_s29, 2  ;;  %v258_v0 = vld [vmem:[%s2135_s3] sm:$0xff] (!%p254_p8)  ;;  %v259_v1 = vld [vmem:[%s2135_s3 + $0x8] sm:$0xff] (!%p254_p8)  ;;  %vm286_vm0 = vcmask (!%p254_p8), 261120   ;;  %v260_v2 = vld [vmem:[%s2135_s3 + $0x10] sm:$0xff] (!%p254_p8)  ;;  %vm297_vm1 = vcmask (!%p254_p8), 654336  }
  0x12   : > { %s1673_s10 = scalar_lea.vmem %s2132_s0, %s1215_s7  ;;  %v278_v3 = vpack.c.bf16 (!%p254_p8), %v259_v1, %v258_v0  ;;  %300 = vst.msk [vmem:[%s2137_s5] sm:$0xff] (!%p254_p8), %vm286_vm0, %v258_v0  ;;  %301 = vst.msk [vmem:[%s2137_s5 + $0x8] sm:$0xff] (!%p254_p8), %vm286_vm0, %v259_v1  ;;  %v261_v4 = vld [vmem:[%s2135_s3 + $0x18] sm:$0xff] (!%p254_p8)  ;;  %v262_v5 = vld [vmem:[%s2135_s3 + $0x20] sm:$0xff] (!%p254_p8) }
  0x13   : > { %302 = vst.msk [vmem:[%s2137_s5 + $0x10] sm:$0xff] (!%p254_p8), %vm286_vm0, %v260_v2  ;;  %v263_v6 = vld [vmem:[%s2135_s3 + $0x28] sm:$0xff] (!%p254_p8)  ;;  %v279_v7 = vpack.c.bf16 (!%p254_p8), %v261_v4, %v260_v2  ;;  %303 = vst.msk [vmem:[%s2137_s5 + $0x18] sm:$0xff] (!%p254_p8), %vm286_vm0, %v261_v4  ;;  %v264_v9 = vld [vmem:[%s2135_s3 + $0x30] sm:$0xff] (!%p254_p8) }
  0x14   : > { %v280_v8 = vpack.c.bf16 (!%p254_p8), %v263_v6, %v262_v5  ;;  %304 = vst.msk [vmem:[%s2137_s5 + $0x20] sm:$0xff] (!%p254_p8), %vm286_vm0, %v262_v5  ;;  %305 = vst.msk [vmem:[%s2137_s5 + $0x28] sm:$0xff] (!%p254_p8), %vm286_vm0, %v263_v6  ;;  %v265_v10 = vld [vmem:[%s2135_s3 + $0x38] sm:$0xff] (!%p254_p8)  ;;  %v266_v11 = vld [vmem:[%s2135_s3 + $0x40] sm:$0xff] (!%p254_p8) }
  0x15   : > { %287 = vst.msk [vmem:[#allocation2] sm:$0xff] (!%p254_p8), %vm286_vm0, %v278_v3  ;;  %v281_v12 = vpack.c.bf16 (!%p254_p8), %v265_v10, %v264_v9  ;;  %306 = vst.msk [vmem:[%s2137_s5 + $0x30] sm:$0xff] (!%p254_p8), %vm286_vm0, %v264_v9  ;;  %v267_v13 = vld [vmem:[%s2135_s3 + $0x48] sm:$0xff] (!%p254_p8)  ;;  %v268_v14 = vld [vmem:[%s2135_s3 + $0x50] sm:$0xff] (!%p254_p8) }
  0x16   : > { %307 = vst.msk [vmem:[%s2137_s5 + $0x38] sm:$0xff] (!%p254_p8), %vm286_vm0, %v265_v10  ;;  %308 = vst.msk [vmem:[%s2137_s5 + $0x40] sm:$0xff] (!%p254_p8), %vm286_vm0, %v266_v11  ;;  %v269_v15 = vld [vmem:[%s2135_s3 + $0x58] sm:$0xff] (!%p254_p8)  ;;  %v282_v16 = vpack.c.bf16 (!%p254_p8), %v267_v13, %v266_v11  ;;  %v270_v18 = vld [vmem:[%s2135_s3 + $0x60] sm:$0xff] (!%p254_p8) }
  0x17   : > { %288 = vst.msk [vmem:[#allocation2 + $0x8] sm:$0xff] %vm286_vm0, %v279_v7  ;;  %289 = vst.msk [vmem:[#allocation2 + $0x10] sm:$0xff] %vm286_vm0, %v280_v8  ;;  %v283_v17 = vpack.c.bf16 %v269_v15, %v268_v14  ;;  %v271_v19 = vld [vmem:[%s2135_s3 + $0x68] sm:$0xff]  ;;  %v272_v20 = vld [vmem:[%s2135_s3 + $0x70] sm:$0xff] }
  0x18   : > { %309 = vst.msk [vmem:[%s2137_s5 + $0x48] sm:$0xff] %vm286_vm0, %v267_v13  ;;  %310 = vst.msk [vmem:[%s2137_s5 + $0x50] sm:$0xff] %vm286_vm0, %v268_v14  ;;  %v284_v21 = vpack.c.bf16 %v271_v19, %v270_v18  ;;  %v273_v22 = vld [vmem:[%s2135_s3 + $0x78] sm:$0xff]  ;;  %v274_v23 = vld [vmem:[%s2136_s4] sm:$0xff] }
  0x19   : > { %311 = vst.msk [vmem:[%s2137_s5 + $0x58] sm:$0xff] %vm286_vm0, %v269_v15  ;;  %290 = vst.msk [vmem:[#allocation2 + $0x18] sm:$0xff] %vm286_vm0, %v281_v12  ;;  %v275_v24 = vld [vmem:[%s2136_s4 + $0x8] sm:$0xff]  ;;  %v285_v25 = vpack.c.bf16 %v273_v22, %v272_v20  ;;  %v276_v27 = vld [vmem:[%s2136_s4 + $0x10] sm:$0xff] }
  0x1a   : > { %312 = vst.msk [vmem:[%s2137_s5 + $0x60] sm:$0xff] %vm286_vm0, %v270_v18  ;;  %313 = vst.msk [vmem:[%s2137_s5 + $0x68] sm:$0xff] %vm286_vm0, %v271_v19  ;;  %v295_v26 = vpack.c.bf16 %v275_v24, %v274_v23  ;;  %v277_v28 = vld [vmem:[%s2136_s4 + $0x18] sm:$0xff] }
  0x1b   : > { %314 = vst.msk [vmem:[%s2137_s5 + $0x70] sm:$0xff] %vm286_vm0, %v272_v20  ;;  %291 = vst.msk [vmem:[#allocation2 + $0x20] sm:$0xff] %vm286_vm0, %v282_v16  ;;  %v296_v29 = vpack.c.bf16 %v277_v28, %v276_v27 }
  0x1c   : > { %292 = vst.msk [vmem:[#allocation2 + $0x28] sm:$0xff] %vm286_vm0, %v283_v17  ;;  %315 = vst.msk [vmem:[%s2137_s5 + $0x78] sm:$0xff] %vm286_vm0, %v273_v22 }
  0x1d   : > { %316 = vst.msk [vmem:[#allocation5] sm:$0xff] %vm297_vm1, %v274_v23  ;;  %317 = vst.msk [vmem:[#allocation5 + $0x8] sm:$0xff] %vm297_vm1, %v275_v24 }
  0x1e   : > { %293 = vst.msk [vmem:[#allocation2 + $0x30] sm:$0xff] %vm286_vm0, %v284_v21  ;;  %294 = vst.msk [vmem:[#allocation2 + $0x38] sm:$0xff] %vm286_vm0, %v285_v25 }
  0x1f   : > { %318 = vst.msk [vmem:[#allocation5 + $0x10] sm:$0xff] %vm297_vm1, %v276_v27  ;;  %319 = vst.msk [vmem:[#allocation5 + $0x18] sm:$0xff] %vm297_vm1, %v277_v28 }
  0x20   : > { %298 = vst.msk [vmem:[#allocation3] sm:$0xff] %vm297_vm1, %v295_v26  ;;  %299 = vst.msk [vmem:[#allocation3 + $0x8] sm:$0xff] %vm297_vm1, %v296_v29 }
  0x21 PF: > { %p320_p9 = scmp.eq.s32.totalorder %s1571_s22, 2 }
  0x23   : > { %p321_p10 = pnand %p320_p9, %p253_p7 }
  0x24   : > { %v325_v30 = vld [vmem:[#allocation5] sm:$0xff] (!%p321_p10)  ;;  %v326_v31 = vld [vmem:[#allocation5 + $0x8] sm:$0xff] (!%p321_p10)  ;;  %vm362_vm2 = vcmask (!%p321_p10), 654336   ;;  %v1585_v32 = vmov (!%p321_p10), 0.0|0.0   ;;  %vm1586_vm4 = vmmov (!%p321_p10), 0   ;;  %v1587_v34 = vmov (!%p321_p10), 0.0  }
  0x25   : > { %324 = sbr.rel (%p321_p10) target bundleno = 867 (0x363), region = 48  ;;  %1425 = vmatprep.subr.bf16.mxu0 (!%p321_p10), %v1585_v32  ;;  %v1426_v33 = vpack.c.bf16 (!%p321_p10), %v326_v31, %v325_v30  ;;  %vm1427_vm3 = vmpackc.low (!%p321_p10), %vm362_vm2, %vm362_vm2  ;;  %1337 = vmatprep.mubr.msk.f32.mxu0 (!%p321_p10), %vm1586_vm4, %v1587_v34  ;;  %v346_v35 = vld [vmem:[%s2133_s1] sm:$0xff] (!%p321_p10)  ;;  %v347_v38 = vld [vmem:[%s2133_s1 + $0x8] sm:$0xff] (!%p321_p10)  ;;  %vm448_vm5 = vcmask (!%p321_p10), 64512   ;;  %vm643_vm6 = vcmask (!%p321_p10), 261120  }
  0x26   : > { %660 = vxpose.xlu0.b32.start [1/16] (narrow) (!%p321_p10), %v346_v35, 8  ;;  %v327_v36 = vld [vmem:[#allocation5 + $0x10] sm:$0xff] (!%p321_p10)  ;;  %v328_v37 = vld [vmem:[#allocation5 + $0x18] sm:$0xff] (!%p321_p10)  ;;  %v348_v40 = vld [vmem:[%s2133_s1 + $0x10] sm:$0xff] (!%p321_p10)  ;;  %1342 = vmatprep.mubr.msk.f32.mxu1 (!%p321_p10), %vm448_vm5, %v346_v35 }
  0x27   : > { %1428 = vmatpush3.bf16.xpose.msk.msra.mxu0 (!%p321_p10), %vm1427_vm3, %v1426_v33  ;;  %v1430_v39 = vpack.c.bf16 (!%p321_p10), %v328_v37, %v327_v36  ;;  %v345_v41 = vld [vmem:[%s2134_s2] sm:$0xff] (!%p321_p10)  ;;  %v349_v42 = vld [vmem:[%s2133_s1 + $0x18] sm:$0xff] (!%p321_p10)  ;;  %v351_v44 = vld [vmem:[%s2133_s1 + $0x28] sm:$0xff] (!%p321_p10) }
  0x28   : > { %1429 = vmatprep.subr.bf16.mxu0 (!%p321_p10), %v1585_v32  ;;  %v350_v43 = vld [vmem:[%s2133_s1 + $0x20] sm:$0xff] (!%p321_p10)  ;;  %v352_v45 = vld [vmem:[%s2133_s1 + $0x30] sm:$0xff] (!%p321_p10)  ;;  %v353_v46 = vld [vmem:[%s2133_s1 + $0x38] sm:$0xff] (!%p321_p10) }
  0x29   : > { %v354_v47 = vld [vmem:[%s2133_s1 + $0x40] sm:$0xff] (!%p321_p10)  ;;  %v355_v48 = vld [vmem:[%s2133_s1 + $0x48] sm:$0xff] (!%p321_p10)  ;;  %v356_v49 = vld [vmem:[%s2133_s1 + $0x50] sm:$0xff] (!%p321_p10) }
  0x2a   : > { %661 = vxpose.xlu0.b32.cont [2/16] (narrow) (!%p321_p10), %v347_v38, 8  ;;  %v357_v50 = vld [vmem:[%s2133_s1 + $0x58] sm:$0xff] (!%p321_p10)  ;;  %v358_v51 = vld [vmem:[%s2133_s1 + $0x60] sm:$0xff] (!%p321_p10)  ;;  %v359_v52 = vld [vmem:[%s2133_s1 + $0x68] sm:$0xff] (!%p321_p10) }
  0x2b   : > { %v360_v53 = vld [vmem:[%s2133_s1 + $0x70] sm:$0xff] (!%p321_p10)  ;;  %v361_v54 = vld [vmem:[%s2133_s1 + $0x78] sm:$0xff] (!%p321_p10)  ;;  %v329_v55 = vld [vmem:[%s2137_s5] sm:$0xff] (!%p321_p10) }
  0x2c   : > { %v330_v56 = vld [vmem:[%s2137_s5 + $0x8] sm:$0xff]  ;;  %v331_v60 = vld [vmem:[%s2137_s5 + $0x10] sm:$0xff]  ;;  %v332_v61 = vld [vmem:[%s2137_s5 + $0x18] sm:$0xff] }
  0x2d   : > { %v1434_v58 = vpack.c.bf16 %v330_v56, %v329_v55  ;;  %v1437_v62 = vpack.c.bf16 %v332_v61, %v331_v60  ;;  %v333_v63 = vld [vmem:[%s2137_s5 + $0x20] sm:$0xff]  ;;  %v334_v0 = vld [vmem:[%s2137_s5 + $0x28] sm:$0xff]  ;;  %v335_v2 = vld [vmem:[%s2137_s5 + $0x30] sm:$0xff] }
  0x2e   : > { %662 = vxpose.xlu0.b32.cont [3/16] (narrow) %v348_v40, 8  ;;  %v1440_v1 = vpack.c.bf16 %v334_v0, %v333_v63  ;;  %v336_v3 = vld [vmem:[%s2137_s5 + $0x38] sm:$0xff]  ;;  %v337_v5 = vld [vmem:[%s2137_s5 + $0x40] sm:$0xff]  ;;  %v338_v6 = vld [vmem:[%s2137_s5 + $0x48] sm:$0xff] }
  0x2f   : > { %1432 = vmatpush3.bf16.xpose.msk.msra.mxu0 %vm1427_vm3, %v1430_v39  ;;  %v1443_v4 = vpack.c.bf16 %v336_v3, %v335_v2  ;;  %v1446_v7 = vpack.c.bf16 %v338_v6, %v337_v5  ;;  %v339_v8 = vld [vmem:[%s2137_s5 + $0x50] sm:$0xff]  ;;  %v340_v9 = vld [vmem:[%s2137_s5 + $0x58] sm:$0xff]  ;;  %v341_v11 = vld [vmem:[%s2137_s5 + $0x60] sm:$0xff] }
  0x30   : > { %1401 = vmatprep.subr.mxu0 %v345_v41  ;;  %v1449_v10 = vpack.c.bf16 %v340_v9, %v339_v8  ;;  %v342_v12 = vld [vmem:[%s2137_s5 + $0x68] sm:$0xff]  ;;  %v343_v14 = vld [vmem:[%s2137_s5 + $0x70] sm:$0xff]  ;;  %v344_v15 = vld [vmem:[%s2137_s5 + $0x78] sm:$0xff] }
  0x31   : > { %v1452_v13 = vpack.c.bf16 %v342_v12, %v341_v11  ;;  %v1455_v16 = vpack.c.bf16 %v344_v15, %v343_v14 }
  0x32   : > { %663 = vxpose.xlu0.b32.cont [4/16] (narrow) %v349_v42, 8 }
  0x36   : > { %1338 = vmatmul.mubr.msk.f32.vlgmr.msra.gmra.mrb[0].mxu0 %vm362_vm2, %v345_v41  ;;  %664 = vxpose.xlu0.b32.cont [5/16] (narrow) %v350_v43, 8 }
  0x37   : > { %1402 = vmatpush3.msra.mxu0 %v345_v41 }
  0x3a   : > { %665 = vxpose.xlu0.b32.cont [6/16] (narrow) %v351_v44, 8 }
  0x3e   : > { %666 = vxpose.xlu0.b32.cont [7/16] (narrow) %v352_v45, 8 }
  0x42   : > { %667 = vxpose.xlu0.b32.cont [8/16] (narrow) %v353_v46, 8 }
  0x46   : > { %668 = vxpose.xlu0.b32.cont [9/16] (narrow) %v354_v47, 8 }
  0x4a   : > { %669 = vxpose.xlu0.b32.cont [10/16] (narrow) %v355_v48, 8 }
  0x4e   : > { %670 = vxpose.xlu0.b32.cont [11/16] (narrow) %v356_v49, 8 }
  0x52   : > { %671 = vxpose.xlu0.b32.cont [12/16] (narrow) %v357_v50, 8 }
  0x56   : > { %672 = vxpose.xlu0.b32.cont [13/16] (narrow) %v358_v51, 8 }
  0x5a   : > { %673 = vxpose.xlu0.b32.cont [14/16] (narrow) %v359_v52, 8 }
  0x5e   : > { %674 = vxpose.xlu0.b32.cont [15/16] (narrow) %v360_v53, 8 }
  0x62   : > { %675 = vxpose.xlu0.b32.end [16/16] (narrow) %v361_v54, 8 }
  0xa6   : > { %v676_v17 = vpop.trf.xlu0 }
 0x109   : > { %v444_v57 = vpop.f32.mrb[0].mxu0 }
 0x10a   : > { %v1339_v59 = vpop.f32.mrb[1].mxu0  ;;  %1340 = vmatprep.subr.mxu1 %v444_v57 }
 0x10b   : > { %1341 = vmatpush3.msra.mxu1 %v444_v57 }
 0x10c   : > { %1343 = vmatmul.mubr.msk.f32.vlgmr.msra.gmra.mrb[0].mxu1 %vm448_vm5, %v347_v38  ;;  %1433 = vmatprep.subr.bf16.mxu1 %v1585_v32 }
 0x10d   : > { %1435 = vmatpush3.bf16.msra.mxu1 %v1434_v58  ;;  %1345 = vmatprep.mubr.msk.f32.mxu1 %vm448_vm5, %v348_v40 }
 0x10e   : > { %1436 = vmatprep.subr.bf16.mxu1 %v1585_v32 }
 0x110   : > { %1346 = vmatmul.mubr.msk.f32.gmra.mrb[2].mxu1 %vm448_vm5, %v349_v42 }
 0x111   : > { %1438 = vmatpush3.bf16.msra.mxu1 %v1437_v62  ;;  %1348 = vmatprep.mubr.msk.f32.mxu1 %vm448_vm5, %v350_v43 }
 0x112   : > { %1439 = vmatprep.subr.bf16.mxu1 %v1585_v32 }
 0x114   : > { %1349 = vmatmul.mubr.msk.f32.gmra.mrb[4].mxu1 %vm448_vm5, %v351_v44 }
 0x115   : > { %1441 = vmatpush3.bf16.msra.mxu1 %v1440_v1  ;;  %1351 = vmatprep.mubr.msk.f32.mxu1 %vm448_vm5, %v352_v45 }
 0x116   : > { %1442 = vmatprep.subr.bf16.mxu1 %v1585_v32 }
 0x118   : > { %1352 = vmatmul.mubr.msk.f32.gmra.mrb[6].mxu1 %vm448_vm5, %v353_v46 }
 0x119   : > { %1444 = vmatpush3.bf16.msra.mxu1 %v1443_v4  ;;  %1354 = vmatprep.mubr.msk.f32.mxu1 %vm448_vm5, %v354_v47 }
 0x11a   : > { %1445 = vmatprep.subr.bf16.mxu1 %v1585_v32 }
 0x11c   : > { %1355 = vmatmul.mubr.msk.f32.gmra.mrb[8].mxu1 %vm448_vm5, %v355_v48 }
 0x11d   : > { %1447 = vmatpush3.bf16.msra.mxu1 %v1446_v7  ;;  %1357 = vmatprep.mubr.msk.f32.mxu1 %vm448_vm5, %v356_v49 }
 0x11e   : > { %1448 = vmatprep.subr.bf16.mxu1 %v1585_v32 }
 0x120   : > { %1358 = vmatmul.mubr.msk.f32.gmra.mrb[10].mxu1 %vm448_vm5, %v357_v50 }
 0x121   : > { %1450 = vmatpush3.bf16.msra.mxu1 %v1449_v10  ;;  %1360 = vmatprep.mubr.msk.f32.mxu1 %vm448_vm5, %v358_v51 }
 0x122   : > { %1451 = vmatprep.subr.bf16.mxu1 %v1585_v32 }
 0x124   : > { %1361 = vmatmul.mubr.msk.f32.gmra.mrb[12].mxu1 %vm448_vm5, %v359_v52 }
 0x125   : > { %1453 = vmatpush3.bf16.msra.mxu1 %v1452_v13  ;;  %1363 = vmatprep.mubr.msk.f32.mxu1 %vm448_vm5, %v360_v53 }
 0x126   : > { %1454 = vmatprep.subr.bf16.mxu1 %v1585_v32 }
 0x128   : > { %1364 = vmatmul.mubr.msk.f32.gmra.mrb[14].mxu1 %vm448_vm5, %v361_v54 }
 0x129   : > { %1456 = vmatpush3.bf16.msra.mxu1 %v1455_v16  ;;  %1398 = vmatprep.mubr.msk.f32.mxu1 %vm1586_vm4, %v1587_v34 }
 0x12c   : > { %1399 = vmatmul.mubr.f32.vlgmr.msra.gmra.mrb[16].mxu1 %v676_v17 }
 0x1df   : > { %v1344_v18 = vpop.f32.mrb[0].mxu1 }
 0x1e0   : > { %1239 = vst.msk [vmem:[%s2137_s5 + $0x88] sm:$0xff] %vm643_vm6, %v1344_v18  ;;  %v563_v19 = vpop.f32.mrb[1].mxu1 }
 0x1e1   : > { %1238 = vst.msk [vmem:[%s2137_s5 + $0x80] sm:$0xff] %vm643_vm6, %v563_v19 }
 0x1e3   : > { %v1347_v20 = vpop.f32.mrb[2].mxu1 }
 0x1e4   : > { %1241 = vst.msk [vmem:[%s2137_s5 + $0x98] sm:$0xff] %vm643_vm6, %v1347_v20  ;;  %v573_v21 = vpop.f32.mrb[3].mxu1 }
 0x1e5   : > { %1240 = vst.msk [vmem:[%s2137_s5 + $0x90] sm:$0xff] %vm643_vm6, %v573_v21 }
 0x1e7   : > { %v1350_v22 = vpop.f32.mrb[4].mxu1 }
 0x1e8   : > { %1243 = vst.msk [vmem:[%s2137_s5 + $0xa8] sm:$0xff] %vm643_vm6, %v1350_v22  ;;  %v583_v23 = vpop.f32.mrb[5].mxu1 }
 0x1e9   : > { %1242 = vst.msk [vmem:[%s2137_s5 + $0xa0] sm:$0xff] %vm643_vm6, %v583_v23 }
 0x1eb   : > { %v1353_v24 = vpop.f32.mrb[6].mxu1 }
 0x1ec   : > { %1245 = vst.msk [vmem:[%s2137_s5 + $0xb8] sm:$0xff] %vm643_vm6, %v1353_v24  ;;  %v593_v25 = vpop.f32.mrb[7].mxu1 }
 0x1ed   : > { %1244 = vst.msk [vmem:[%s2137_s5 + $0xb0] sm:$0xff] %vm643_vm6, %v593_v25 }
 0x1ef   : > { %v1356_v26 = vpop.f32.mrb[8].mxu1 }
 0x1f0   : > { %1247 = vst.msk [vmem:[%s2137_s5 + $0xc8] sm:$0xff] %vm643_vm6, %v1356_v26  ;;  %v603_v27 = vpop.f32.mrb[9].mxu1 }
 0x1f1   : > { %1246 = vst.msk [vmem:[%s2137_s5 + $0xc0] sm:$0xff] %vm643_vm6, %v603_v27 }
 0x1f3   : > { %v1359_v28 = vpop.f32.mrb[10].mxu1 }
 0x1f4   : > { %1249 = vst.msk [vmem:[%s2137_s5 + $0xd8] sm:$0xff] %vm643_vm6, %v1359_v28  ;;  %v613_v29 = vpop.f32.mrb[11].mxu1 }
 0x1f5   : > { %1248 = vst.msk [vmem:[%s2137_s5 + $0xd0] sm:$0xff] %vm643_vm6, %v613_v29 }
 0x1f7   : > { %v1362_v30 = vpop.f32.mrb[12].mxu1 }
 0x1f8   : > { %1251 = vst.msk [vmem:[%s2137_s5 + $0xe8] sm:$0xff] %vm643_vm6, %v1362_v30  ;;  %v623_v31 = vpop.f32.mrb[13].mxu1 }
 0x1f9   : > { %1250 = vst.msk [vmem:[%s2137_s5 + $0xe0] sm:$0xff] %vm643_vm6, %v623_v31 }
 0x1fb   : > { %v1365_v32 = vpop.f32.mrb[14].mxu1 }
 0x1fc   : > { %1253 = vst.msk [vmem:[%s2137_s5 + $0xf8] sm:$0xff] %vm643_vm6, %v1365_v32  ;;  %v633_v33 = vpop.f32.mrb[15].mxu1 }
 0x1fd   : > { %1252 = vst.msk [vmem:[%s2137_s5 + $0xf0] sm:$0xff] %vm643_vm6, %v633_v33 }
 0x1ff   : > { %v758_v34 = vpop.f32.mrb[16].mxu1 }
 0x200   : > { %762 = vxpose.xlu1.b32.start.end [1/1] (short) (narrow) %v758_v34, 32  ;;  %v1400_v35 = vpop.f32.mrb[17].mxu1 }
 0x280   : > { %v778_v36 = vpop.trf.xlu1 }
 0x281   : > { %1403 = vmatprep.mubr.msk.f32.mxu0 %vm448_vm5, %v778_v36 }
 0x284   : > { %v779_v37 = vpop.trf.xlu1 }
 0x285   : > { %1404 = vmatmul.mubr.msk.f32.vlgmr.msra.gmra.mrb[2].mxu0 %vm448_vm5, %v779_v37 }
 0x288   : > { %v780_v38 = vpop.trf.xlu1 }
 0x289   : > { %1406 = vmatprep.mubr.msk.f32.mxu0 %vm448_vm5, %v780_v38 }
 0x28c   : > { %v781_v39 = vpop.trf.xlu1 }
 0x28d   : > { %1407 = vmatmul.mubr.msk.f32.gmra.mrb[4].mxu0 %vm448_vm5, %v781_v39 }
 0x358   : > { %v1405_v40 = vpop.f32.mrb[2].mxu0 }
 0x359   : > { %893 = vst.msk [vmem:[#allocation5 + $0x28] sm:$0xff] %vm362_vm2, %v1405_v40  ;;  %v872_v41 = vpop.f32.mrb[3].mxu0 }
 0x35a   : > { %892 = vst.msk [vmem:[#allocation5 + $0x20] sm:$0xff] %vm362_vm2, %v872_v41 }
 0x360   : > { %v1408_v42 = vpop.f32.mrb[4].mxu0 }
 0x361   : > { %895 = vst.msk [vmem:[#allocation5 + $0x38] sm:$0xff] %vm362_vm2, %v1408_v42  ;;  %v882_v43 = vpop.f32.mrb[5].mxu0 }
 0x362   : > { %894 = vst.msk [vmem:[#allocation5 + $0x30] sm:$0xff] %vm362_vm2, %v882_v43 }
 0x363 PF: > { %p1258_p11 = scmp.ne.s32.totalorder %s1567_s21, 0 }
 0x364   : > { %vm899_vm7 = vcmask (!%p1258_p11), 654336   ;;  %v1588_v44 = vmov (!%p1258_p11), 0.0  }
 0x365   : > { %898 = sbr.rel (%p1258_p11) target bundleno = 876 (0x36c), region = 52  ;;  %900 = vst.msk [vmem:[#allocation4] sm:$0xff] (!%p1258_p11), %vm899_vm7, %v1588_v44  ;;  %901 = vst.msk [vmem:[#allocation4 + $0x8] sm:$0xff] (!%p1258_p11), %vm899_vm7, %v1588_v44 }
 0x366   : > { %902 = vst.msk [vmem:[#allocation4 + $0x10] sm:$0xff] (!%p1258_p11), %vm899_vm7, %v1588_v44  ;;  %903 = vst.msk [vmem:[#allocation4 + $0x18] sm:$0xff] (!%p1258_p11), %vm899_vm7, %v1588_v44 }
 0x36c PF: > { %s908_s13 = sshra.s32 %s1216_s30, 4  ;;  %v914_v45 = vld [vmem:[#allocation3] sm:$0xff]  ;;  %vm926_vm8 = vcmask 654336   ;;  %v915_v46 = vld [vmem:[#allocation3 + $0x8] sm:$0xff]  ;;  %vm1010_vm9 = vcmask 261120   ;;  %s2042_s17 = scalar_lea.vmem %s2137_s5, %s1216_s30  ;;  %v988_v6 = vld [vmem:[#allocation4] sm:$0xff] }
 0x36d   : > { %s1259_s14 = sshll.u32 %s908_s13, 3  ;;  %1457 = vmatprep.subr.msk.bf16.mxu0 %vm926_vm8, %v914_v45  ;;  %v934_v47 = vsel %vm926_vm8, %v914_v45, 0  ;;  %v1513_v48 = vld [vmem:[%s1673_s10] sm:$0xff]   ;;  %v1514_v50 = vld [vmem:[%s1673_s10 + $0x8] sm:$0xff]   ;;  %v937_v52 = vsel %vm926_vm8, %v915_v46, 0  ;;  %v1077_v55 = vld [vmem:[%s2042_s17 + $0x10] sm:$0xff] }
 0x36e   : > { %1410 = vmatpush3.bf16.xpose.msra.mxu0 %v934_v47  ;;  %s2026_s15 = scalar_lea.vmem [#allocation2], %s1259_s14  ;;  %1417 = vmatprep.subr.bf16.mxu1 %v1513_v48  ;;  %v1075_v56 = vld [vmem:[%s2042_s17] sm:$0xff]  ;;  %v1078_v58 = vld [vmem:[%s2042_s17 + $0x18] sm:$0xff]  ;;  %v1076_v61 = vld [vmem:[%s2042_s17 + $0x8] sm:$0xff]  ;;  %p1266_p12 = scmp.ne.s32.totalorder %s1571_s22, 0 }
 0x36f   : > { %v912_v49 = vld [vmem:[%s2026_s15] sm:$0xff]  ;;  %1458 = vmatprep.subr.msk.bf16.mxu0 %vm926_vm8, %v915_v46  ;;  %1418 = vmatpush3.bf16.msra.mxu1 %v1513_v48  ;;  %v913_v51 = vld [vmem:[%s2026_s15 + $0x8] sm:$0xff]  ;;  %v989_v11 = vld [vmem:[#allocation4 + $0x8] sm:$0xff] }
 0x370   : > { %992 = vxpose.xlu0.c.b16.start [1/2] (short) (narrow) %v912_v49, 32  ;;  %1413 = vmatprep.mubr.msk.bf16.mxu0 %vm926_vm8, %v1513_v48  ;;  %v990_v5 = vld [vmem:[#allocation4 + $0x10] sm:$0xff]  ;;  %v991_v8 = vld [vmem:[#allocation4 + $0x18] sm:$0xff] }
 0x371   : > { %1419 = vmatprep.subr.bf16.mxu1 %v1514_v50 }
 0x373   : > { %1420 = vmatpush3.bf16.msra.mxu1 %v1514_v50 }
 0x374   : > { %993 = vxpose.xlu0.c.b16.end [2/2] (short) (narrow) %v913_v51, 32 }
 0x376   : > { %1412 = vmatpush3.bf16.xpose.msra.mxu0 %v937_v52 }
 0x37d   : > { %1414 = vmatmul.mubr.msk.bf16.vlgmr.msra.gmra.mrb[0].mxu0 %vm926_vm8, %v1514_v50 }
 0x3d6   : > { %v1000_v53 = vpop.trf.xlu0 }
 0x3d7   : > { %1421 = vmatprep.mubr.msk.bf16.mxu1 %vm1010_vm9, %v1000_v53 }
 0x3da   : > { %v1001_v54 = vpop.trf.xlu0 }
 0x3db   : > { %1422 = vmatmul.mubr.msk.bf16.vlgmr.msra.gmra.mrb[0].mxu1 %vm1010_vm9, %v1001_v54 }
 0x450   : > { %v1415_v57 = vpop.f32.mrb[0].mxu0 }
 0x451   : > { %v1081_v59 = vadd.f32 %v1415_v57, %v1077_v55  ;;  %v973_v60 = vpop.f32.mrb[1].mxu0  ;;  %1270 = vst.msk [vmem:[%s2042_s17 + $0x110] sm:$0xff] (!%p1266_p12), %vm1010_vm9, %v1415_v57 }
 0x452   : > { %v1079_v62 = vadd.f32 %v1075_v56, %v973_v60  ;;  %v1416_v63 = vpop.f32.mrb[2].mxu0  ;;  %1268 = vst.msk [vmem:[%s2042_s17 + $0x100] sm:$0xff] (!%p1266_p12), %vm1010_vm9, %v973_v60 }
 0x453   : > { %1085 = vst.msk [vmem:[%s2042_s17 + $0x10] sm:$0xff] %vm1010_vm9, %v1081_v59  ;;  %v1082_v0 = vadd.f32 %v1416_v63, %v1078_v58  ;;  %v1088_v1 = vpack.c.bf16 %v1416_v63, %v1415_v57  ;;  %v976_v2 = vpop.f32.mrb[3].mxu0  ;;  %1271 = vst.msk [vmem:[%s2042_s17 + $0x118] sm:$0xff] (!%p1266_p12), %vm1010_vm9, %v1416_v63 }
 0x454   : > { %1083 = vst.msk [vmem:[%s2042_s17] sm:$0xff] %vm1010_vm9, %v1079_v62  ;;  %v1080_v3 = vadd.f32 %v1076_v61, %v976_v2  ;;  %v1087_v4 = vpack.c.bf16 %v976_v2, %v973_v60  ;;  %1269 = vst.msk [vmem:[%s2042_s17 + $0x108] sm:$0xff] (!%p1266_p12), %vm1010_vm9, %v976_v2 }
 0x455   : > { %1086 = vst.msk [vmem:[%s2042_s17 + $0x18] sm:$0xff] %vm1010_vm9, %v1082_v0  ;;  %1090 = vst.msk [vmem:[%s2026_s15 + $0x8] sm:$0xff] %vm1010_vm9, %v1088_v1 }
 0x456   : > { %1084 = vst.msk [vmem:[%s2042_s17 + $0x8] sm:$0xff] %vm1010_vm9, %v1080_v3  ;;  %1089 = vst.msk [vmem:[%s2026_s15] sm:$0xff] %vm1010_vm9, %v1087_v4 }
 0x4ae   : > { %v1423_v7 = vpop.f32.mrb[0].mxu1  ;;  %1093 = sbr.rel (%p1266_p12) target bundleno = 1205 (0x4b5), region = 56 }
 0x4af   : > { %v1068_v9 = vadd.f32 %v1423_v7, %v990_v5  ;;  %v1051_v10 = vpop.f32.mrb[1].mxu1 }
 0x4b0   : > { %v1066_v12 = vadd.f32 %v1051_v10, %v988_v6  ;;  %v1424_v13 = vpop.f32.mrb[2].mxu1 }
 0x4b1   : > { %1072 = vst.msk [vmem:[#allocation4 + $0x10] sm:$0xff] %vm926_vm8, %v1068_v9  ;;  %v1069_v14 = vadd.f32 %v1424_v13, %v991_v8  ;;  %v1054_v15 = vpop.f32.mrb[3].mxu1 }
 0x4b2   : > { %1070 = vst.msk [vmem:[#allocation4] sm:$0xff] %vm926_vm8, %v1066_v12  ;;  %v1067_v16 = vadd.f32 %v1054_v15, %v989_v11 }
 0x4b3   : > { %1073 = vst.msk [vmem:[#allocation4 + $0x18] sm:$0xff] %vm926_vm8, %v1069_v14 }
 0x4b4   : > { %1071 = vst.msk [vmem:[#allocation4 + $0x8] sm:$0xff] %vm926_vm8, %v1067_v16 }
 0x4b5 PF: > { %p1100_p13 = scmp.eq.s32.totalorder %s1567_s21, 3  ;;  %p1272_p0 = scmp.ne.s32.totalorder %s1567_s21, 3 }
 0x4b6   : > { %v1108_v18 = vld [vmem:[#allocation5] sm:$0xff] (!%p1272_p0)  ;;  %v1109_v21 = vld [vmem:[#allocation5 + $0x8] sm:$0xff] (!%p1272_p0)  ;;  %v1110_v23 = vld [vmem:[#allocation5 + $0x10] sm:$0xff] (!%p1272_p0) }
 0x4b7   : > { %1103 = sbr.rel (%p1272_p0) target bundleno = 1215 (0x4bf), region = 60  ;;  %v1111_v28 = vld [vmem:[#allocation5 + $0x18] sm:$0xff] (!%p1272_p0) }
 0x4b8   : > { %v1106_v22 = vld [vmem:[#allocation4 + $0x10] sm:$0xff] (!%p1272_p0) }
 0x4b9   : > { %v1104_v17 = vld [vmem:[#allocation4] sm:$0xff] (!%p1272_p0)  ;;  %v1114_v26 = vadd.f32 (!%p1272_p0), %v1110_v23, %v1106_v22 }
 0x4ba   : > { %v1112_v20 = vadd.f32 (!%p1272_p0), %v1108_v18, %v1104_v17  ;;  %v1107_v27 = vld [vmem:[#allocation4 + $0x18] sm:$0xff] (!%p1272_p0) }
 0x4bb   : > { %v1105_v19 = vld [vmem:[#allocation4 + $0x8] sm:$0xff] (!%p1272_p0)  ;;  %v1115_v29 = vadd.f32 (!%p1272_p0), %v1111_v28, %v1107_v27  ;;  %v1121_v30 = vpack.c.bf16 (!%p1272_p0), %v1107_v27, %v1106_v22  ;;  %1118 = vst.msk [vmem:[#allocation5 + $0x10] sm:$0xff] (!%p1272_p0), %vm926_vm8, %v1114_v26 }
 0x4bc   : > { %v1120_v24 = vpack.c.bf16 (!%p1272_p0), %v1105_v19, %v1104_v17  ;;  %v1113_v25 = vadd.f32 (!%p1272_p0), %v1109_v21, %v1105_v19  ;;  %1116 = vst.msk [vmem:[#allocation5] sm:$0xff] (!%p1272_p0), %vm926_vm8, %v1112_v20 }
 0x4bd   : > { %1119 = vst.msk [vmem:[#allocation5 + $0x18] sm:$0xff] (!%p1272_p0), %vm926_vm8, %v1115_v29  ;;  %1123 = vst.msk [vmem:[#allocation3 + $0x8] sm:$0xff] (!%p1272_p0), %vm926_vm8, %v1121_v30 }
 0x4be   : > { %1122 = vst.msk [vmem:[#allocation3] sm:$0xff] %vm926_vm8, %v1120_v24  ;;  %1117 = vst.msk [vmem:[#allocation5 + $0x8] sm:$0xff] %vm926_vm8, %v1113_v25 }
 0x4bf PF: > { %p1124_p1 = pnand %p1100_p13, %p252_p6 }
 0x4c0   : > { %v1128_v31 = vld [vmem:[#allocation4] sm:$0xff] (!%p1124_p1)  ;;  %v1129_v32 = vld [vmem:[#allocation4 + $0x8] sm:$0xff] (!%p1124_p1)  ;;  %v1130_v33 = vld [vmem:[#allocation4 + $0x10] sm:$0xff] (!%p1124_p1) }
 0x4c1   : > { %1127 = sbr.rel (%p1124_p1) target bundleno = 1224 (0x4c8), region = 64  ;;  %1133 = vst.msk [vmem:[#allocation5 + $0x40] sm:$0xff] (!%p1124_p1), %vm926_vm8, %v1128_v31  ;;  %1134 = vst.msk [vmem:[#allocation5 + $0x48] sm:$0xff] (!%p1124_p1), %vm926_vm8, %v1129_v32  ;;  %v1131_v34 = vld [vmem:[#allocation4 + $0x18] sm:$0xff] (!%p1124_p1) }
 0x4c2   : > { %1135 = vst.msk [vmem:[#allocation5 + $0x50] sm:$0xff] (!%p1124_p1), %vm926_vm8, %v1130_v33  ;;  %1136 = vst.msk [vmem:[#allocation5 + $0x58] sm:$0xff] (!%p1124_p1), %vm926_vm8, %v1131_v34 }
 0x4c8 PF: > { %p2091_p2 = scmp.eq.s32.totalorder %s1210_s26, 11  ;;  %s1589_s21 = smov [#allocation5]  }
 0x4c9   : > { %s1146_s30 = sshll.u32 %s1589_s21, 4  ;;  %s1147_s30 = int_to_ptr.vmem [resolvable:$true] %s1146_s30 }
 0x4ca   : > { %s1515_s18 = scalar_lea.vmem %s1147_s30, 1536  ;;  %p1522_p6 = scmp.lt.s32.totalorder %s1147_s30, %s1147_s30 }
 0x4cb   : > { %p1516_p3 = scmp.ne.s32.totalorder %s1147_s30, %s1515_s18  ;;  %p1523_p7 = scmp.lt.s32.totalorder %s1515_s18, %s1515_s18 }
 0x4cd   : > { %p1517_p4 = pnand %p1516_p3, %p2091_p2  ;;  %p1524_p8 = por %p1523_p7, %p1522_p6 }
 0x4cf   : > { %p1518_p5 = pneg %p1517_p4 }
 0x4d1   : > { %p1525_p9 = pnand %p1524_p8, %p1518_p5 }
 0x4d3   : > { %1528 = shalt.err (!%p1525_p9)
}
 0x4d4   : > { %s1529_s26 = scalar_lea.hbm %s2138_s6, 1536 }
 0x4d5   : > { %p1530_p10 = scmp.ne.s32.totalorder %s2138_s6, %s1529_s26  ;;  %p1535_p13 = scmp.lt.u32.totalorder %s1529_s26, %s2138_s6 }
 0x4d7   : > { %p1531_p11 = pnand %p1530_p10, %p2091_p2 }
 0x4d9   : > { %p1532_p12 = pneg %p1531_p11 }
 0x4db   : > { %p1537_p0 = pnand %p1535_p13, %p1532_p12 }
 0x4dd   : > { %1540 = shalt.err (!%p1537_p0)
}
 0x4de   : > { %s1590_s11 = smov 128   ;;  %s1591_s12 = smov 8  }
 0x4df   : > { %1460 = dma.vmem_to_hbm [thread:$0]  (%p2091_p2), %s1147_s30, 1536, %s2138_s6, [#allocation6], %s1590_s11, %s1590_s11, %s1591_s12  }
 0x4e0   : > { %1562 = dma.done.wait (%p2091_p2), [#allocation6], 1536  }
 0x4e1   : > { %1564 = vsyncadd (%p2091_p2), [#allocation6], 4294965760 }
 0x4e2 PF: > { %s18_s25 = sadd.s32 1, %s1583_s25   ;;  %s2140_s21 = smov %s1575_s23 }
 0x4e3   : > { %p15_p1 = scmp.ge.s32.totalorder %s18_s25, 14   ;;  %s2141_s22 = smov %s1579_s24 }
 0x4e4   : > { %s2142_s23 = smov %s2145_s27  ;;  %s2143_s24 = smov %s2149_s28 }
 0x4e5   :  { %17 = sbr.rel (!%p15_p1) target bundleno = 3 (0x3), region = 105 }
 0x4ec   :  { %1165 = vsyncpa [#allocation6], 1 }
 0x4ed   :  { %1167 = vsyncpa [#allocation6 + $0x1], 1 }

</bundles_post_ra>
